<compile_context>
chip_gen: v6e
topology: v6e:2x2x1
jax: 0.10.0
libtpu: 0.0.40
codegen_flags: <defaults>
</compile_context>

<pallas_src>
import functools

import jax
import jax.numpy as jnp
from jax.experimental import pallas as pl
from jax.experimental.pallas import tpu as pltpu

LANES = 128
_SMALL_INPUT_ELEMS = 1 << 20     # below this, plain XLA fusion wins


def _round_up(x, m):
    return ((x + m - 1) // m) * m


def _sublane_multiple(dtype):
    # f32 -> 8, bf16/f16 -> 16, int8/bool -> 32 (packed sublane tiling).
    return 8 * max(1, 4 // jnp.dtype(dtype).itemsize)


def _tpu_config():
    """Per-generation (cores_per_chip, per-input tile budget in f32-equivalent
    bytes, scoped VMEM limit)."""
    kind = ""
    try:
        kind = jax.devices()[0].device_kind.lower()
    except Exception:  # no devices / unusual backend -> safe single-core config
        pass
    if "v7" in kind or "7x" in kind:
        # 2 TCs share HBM; only 64 MiB VMEM per TC -> smaller tiles, lower limit.
        return 2, 2 << 20, 40 << 20
    # v5e / v6e: single TensorCore, 128 MiB physical VMEM.
    return 1, 4 << 20, 64 << 20


def _choose_grid(R, sub, target_rows, ncores):
    """Pick (rows_per_blk, blocks_per_core).

    rows_per_blk is always a multiple of `sub` (packed-dtype tile multiple,
    itself a multiple of 8 so the in-kernel (rows/8, 8, 128) view is exact).
    For ncores == 2 the block size is rebalanced so no fully-phantom block
    exists (at most one genuine ragged tail block, masked in-kernel)."""
    if ncores == 1:
        rows_per_blk = min(target_rows, _round_up(R, sub))
        return rows_per_blk, pl.cdiv(R, rows_per_blk)
    # 2-core split (only entered with R >= 2*sub): choose blocks-per-core nk,
    # then the smallest sublane-aligned block that covers R with ncores*nk
    # blocks; shrink nk if that would create a fully-phantom block.
    nk = max(1, pl.cdiv(pl.cdiv(R, ncores), target_rows))
    while True:
        rows_per_blk = _round_up(pl.cdiv(R, ncores * nk), sub)
        if nk == 1 or (ncores * nk - 1) * rows_per_blk < R:
            return rows_per_blk, nk
        nk -= 1


def _dice_kernel(pre_ref, gt_ref, mask_ref, acc_ref, *,
                 rows_per_blk, blocks_per_core, total_rows, tail, batch):
    """Grid = (ncores, blocks_per_core).

    pre_ref/gt_ref/mask_ref : (B, rows_per_blk, 128) VMEM tiles (native dtype)
    acc_ref                 : (1, 3*B, 8, 128) per-core f32 accumulator,
                              resident across the trailing "arbitrary" axis.
                              Rows [0,B) = a, [B,2B) = b, [2B,3B) = c.
    """
    k = pl.program_id(1)

    @pl.when(k == 0)
    def _init():
        acc_ref[...] = jnp.zeros_like(acc_ref)

    p = pre_ref[...].astype(jnp.float32)
    q = gt_ref[...].astype(jnp.float32)
    m = mask_ref[...].astype(jnp.float32)

    def accum(p, q, m):
        pm = p * m
        qm = q * m
        # (B, rows, 128) -> (B, rows/8, 8, 128): summing over axis=1 is pure
        # cross-vreg VPU adds (no per-block XLU sublane reduction); the final
        # 8x128 reduce happens once in the JAX wrapper.
        v4 = (batch, rows_per_blk // 8, 8, LANES)
        sa = jnp.sum((pm * qm).reshape(v4), axis=1)
        sb = jnp.sum((pm * pm).reshape(v4), axis=1)
        sc = jnp.sum((qm * qm).reshape(v4), axis=1)
        acc_ref[...] += jnp.concatenate([sa, sb, sc], axis=0)[None]

    if tail:
        g = pl.program_id(0)
        row0 = (g * blocks_per_core + k) * rows_per_blk

        @pl.when(row0 + rows_per_blk <= total_rows)
        def _full_block():
            accum(p, q, m)

        @pl.when(row0 + rows_per_blk > total_rows)
        def _ragged_block():
            rid = row0 + jax.lax.broadcasted_iota(jnp.int32, p.shape, 1)
            valid = rid < total_rows
            # jnp.where (not multiply) so garbage/NaN in out-of-bounds rows
            # cannot leak into the sums.
            accum(jnp.where(valid, p, 0.0),
                  jnp.where(valid, q, 0.0),
                  jnp.where(valid, m, 0.0))
    else:
        accum(p, q, m)


def dice_loss_ref(pre_score, gt_score, train_mask, eps=1e-6):
    """Pure-JAX reference mirroring the PyTorch forward exactly."""
    B = pre_score.shape[0]
    pre = pre_score.reshape(B, -1).astype(jnp.float32)
    gt = gt_score.reshape(B, -1).astype(jnp.float32)
    mask = train_mask.reshape(B, -1).astype(jnp.float32)
    pre = pre * mask
    gt = gt * mask
    a = jnp.sum(pre * gt, axis=1)
    b = jnp.sum(pre * pre, axis=1) + eps
    c = jnp.sum(gt * gt, axis=1) + eps
    d = 2 * a / (b + c)
    return 1.0 - jnp.mean(d)


def dice_loss(pre_score, gt_score, train_mask, eps=1e-6, *, use_pallas=None):
    """Equivalent of DiceLoss.forward.  Accepts any shapes with a leading batch
    dim; everything after it is flattened (like tensor.view(B, -1))."""
    B = pre_score.shape[0]

    if use_pallas is None:
        use_pallas = pre_score.size >= _SMALL_INPUT_ELEMS
    if not use_pallas:
        # Fixed pallas_call overhead (~us) dominates on tiny inputs.
        return dice_loss_ref(pre_score, gt_score, train_mask, eps)

    def prep(x):
        x = x.reshape(B, -1)
        if not jnp.issubdtype(x.dtype, jnp.floating):
            # bool / 0-1 integer labels & masks: bf16 is exact for these and
            # halves their HBM stream vs f32 (the f32 upcast happens on-chip).
            x = x.astype(jnp.bfloat16)
        elif x.dtype == jnp.float64:
            x = x.astype(jnp.float32)
        return x

    pre, gt, mask = prep(pre_score), prep(gt_score), prep(train_mask)
    N = pre.shape[1]

    # Lane-dense 3-D view needs N to be a multiple of 128; pad only then.
    n128 = _round_up(N, LANES)
    if n128 != N:
        # TODO(synk): rare path; this still materializes padded copies in HBM.
        pad = ((0, 0), (0, n128 - N))
        pre, gt, mask = (jnp.pad(t, pad) for t in (pre, gt, mask))
    R = n128 // LANES

    pre = pre.reshape(B, R, LANES)
    gt = gt.reshape(B, R, LANES)
    mask = mask.reshape(B, R, LANES)

    # Packed sub-32-bit dtypes need 16-row (bf16) / 32-row (int8) tiles.
    sub = max(_sublane_multiple(t.dtype) for t in (pre, gt, mask))

    cores_avail, tile_bytes, vmem_limit = _tpu_config()
    # Tile budget counted in f32 equivalents (covers the on-chip upcast).
    target_rows = max(sub, _round_up(max(1, (tile_bytes // 4) // (B * LANES)), sub))

    # Megacore split only on 2-TC chips and only when each core gets real work.
    ncores = cores_avail if (cores_avail > 1 and R >= 2 * sub) else 1
    rows_per_blk, nk = _choose_grid(R, sub, target_rows, ncores)

    n_blocks_real = pl.cdiv(R, rows_per_blk)
    # True iff some block overhangs R -> enable in-kernel row masking.
    tail = (ncores * nk * rows_per_blk) != R

    def in_map(g, k):
        # _choose_grid guarantees no fully-phantom block; the clamp is cheap
        # scalar defense so a future grid change can never DMA past the array.
        return (0, jnp.minimum(g * nk + k, n_blocks_real - 1), 0)

    in_spec = pl.BlockSpec((B, rows_per_blk, LANES), in_map)
    out_spec = pl.BlockSpec((1, 3 * B, 8, LANES), lambda g, k: (g, 0, 0, 0))
    out_sds = jax.ShapeDtypeStruct((ncores, 3 * B, 8, LANES), jnp.float32)

    kernel = functools.partial(
        _dice_kernel,
        rows_per_blk=rows_per_blk,
        blocks_per_core=nk,
        total_rows=R,
        tail=tail,
        batch=B,
    )

    acc = pl.pallas_call(
        kernel,
        out_shape=out_sds,
        grid_spec=pltpu.PrefetchScalarGridSpec(
            num_scalar_prefetch=0,
            grid=(ncores, nk),
            in_specs=[in_spec, in_spec, in_spec],
            out_specs=out_spec,
        ),
        compiler_params=pltpu.CompilerParams(
            dimension_semantics=("parallel", "arbitrary"),
            vmem_limit_bytes=vmem_limit,
        ),
    )(pre, gt, mask)

    # Tiny epilogue: cross-core + 8x128 sublane/lane reduce, then 2a/(b+c).
    sums = jnp.sum(acc.reshape(ncores, 3, B, 8 * LANES), axis=(0, 3))  # (3, B)
    a = sums[0]
    b = sums[1] + eps
    c = sums[2] + eps
    d = 2.0 * a / (b + c)
    # TODO(synk): PyTorch `assert dice_loss <= 1` is a host-side sanity check;
    # it is reproduced in __main__, not inside the kernel.
    return 1.0 - jnp.mean(d)


if __name__ == "__main__":
    key = jax.random.PRNGKey(0)
    k1, k2, k3, k4, k5, k6 = jax.random.split(key, 6)

    # Case 1: all-float inputs, NCHW (classic det-loss layout).
    B, C, H, W = 2, 4, 16, 16
    pre1 = jax.nn.sigmoid(jax.random.normal(k1, (B, C, H, W), jnp.float32))
    gt1 = (jax.random.uniform(k2, (B, C, H, W)) > 0.5).astype(jnp.float32)
    mk1 = (jax.random.uniform(k3, (B, C, H, W)) > 0.2).astype(jnp.float32)

    loss1 = jax.block_until_ready(dice_loss(pre1, gt1, mk1, use_pallas=True))
    ref1 = jax.block_until_ready(dice_loss_ref(pre1, gt1, mk1))

    # Case 2: boolean gt/mask exercise the reduced-bandwidth bf16 input path.
    H2, W2 = 16, 32
    pre2 = jax.nn.sigmoid(jax.random.normal(k4, (B, C, H2, W2), jnp.float32))
    gt2 = jax.random.uniform(k5, (B, C, H2, W2)) > 0.5
    mk2 = jax.random.uniform(k6, (B, C, H2, W2)) > 0.2

    loss2 = jax.block_until_ready(dice_loss(pre2, gt2, mk2, use_pallas=True))
    ref2 = jax.block_until_ready(dice_loss_ref(pre2, gt2, mk2))

    # Auto-dispatch (tiny input -> pure-JAX fast path) must agree too.
    auto1 = jax.block_until_ready(dice_loss(pre1, gt1, mk1))

    # Mirrors PyTorch's `assert dice_loss <= 1` host-side sanity check.
    assert (1.0 - loss1) <= 1.0 + 1e-6, f"dice sanity check failed: {loss1}"
    assert (1.0 - loss2) <= 1.0 + 1e-6, f"dice sanity check failed: {loss2}"
    assert jnp.allclose(loss1, ref1, atol=1e-5, rtol=1e-5), (loss1, ref1)
    assert jnp.allclose(loss2, ref2, atol=1e-5, rtol=1e-5), (loss2, ref2)
    assert jnp.allclose(auto1, ref1, atol=1e-6, rtol=1e-6), (auto1, ref1)
    print("KERNEL_OK")
</pallas_src>

<mosaic_0001>
module attributes {stable_mosaic.version = 11 : i64} {
  func.func @_dice_kernel(%arg0: i32, %arg1: i32, %arg2: memref<2x8x128xf32, #tpu.memory_space<vmem>>, %arg3: memref<2x8x128xf32, #tpu.memory_space<vmem>>, %arg4: memref<2x8x128xf32, #tpu.memory_space<vmem>>, %arg5: memref<1x6x8x128xf32, #tpu.memory_space<vmem>>) attributes {dimension_semantics = [#tpu.dimension_semantics<parallel>, #tpu.dimension_semantics<arbitrary>], iteration_bounds = array<i64: 1, 1>, scalar_prefetch = 0 : i64, scratch_operands = 0 : i64, tpu.core_type = #tpu.core_type<tc>, window_params = [{transform_indices = @transform_0, window_bounds = array<i64: 2, 8, 128>}, {transform_indices = @transform_1, window_bounds = array<i64: 2, 8, 128>}, {transform_indices = @transform_2, window_bounds = array<i64: 2, 8, 128>}, {transform_indices = @transform_3, window_bounds = array<i64: 1, 6, 8, 128>}]} {
    %c0_i32 = arith.constant 0 : i32
    %0 = arith.cmpi eq, %arg1, %c0_i32 : i32
    %1 = arith.extui %0 : i1 to i32
    %c0_i32_0 = arith.constant 0 : i32
    %2 = arith.cmpi ne, %1, %c0_i32_0 : i32
    scf.if %2 {
      %cst_19 = arith.constant 0.000000e+00 : f32
      %22 = vector.broadcast %cst_19 : f32 to vector<1x6x8x128xf32>
      %c0_20 = arith.constant 0 : index
      %c0_21 = arith.constant 0 : index
      %c0_22 = arith.constant 0 : index
      %c0_23 = arith.constant 0 : index
      %23 = vector.load %arg5[%c0_20, %c0_21, %c0_22, %c0_23] : memref<1x6x8x128xf32, #tpu.memory_space<vmem>>, vector<1x6x8x128xf32>
      tpu.vector_store %arg5[%c0_20, %c0_21, %c0_22, %c0_23], %22 {strides = array<i32>} : memref<1x6x8x128xf32, #tpu.memory_space<vmem>>, vector<1x6x8x128xf32>,
    } else {
    }
    %c0 = arith.constant 0 : index
    %c0_1 = arith.constant 0 : index
    %c0_2 = arith.constant 0 : index
    %3 = vector.load %arg2[%c0, %c0_1, %c0_2] : memref<2x8x128xf32, #tpu.memory_space<vmem>>, vector<2x8x128xf32>
    %c0_3 = arith.constant 0 : index
    %c0_4 = arith.constant 0 : index
    %c0_5 = arith.constant 0 : index
    %4 = vector.load %arg3[%c0_3, %c0_4, %c0_5] : memref<2x8x128xf32, #tpu.memory_space<vmem>>, vector<2x8x128xf32>
    %c0_6 = arith.constant 0 : index
    %c0_7 = arith.constant 0 : index
    %c0_8 = arith.constant 0 : index
    %5 = vector.load %arg4[%c0_6, %c0_7, %c0_8] : memref<2x8x128xf32, #tpu.memory_space<vmem>>, vector<2x8x128xf32>
    %6 = arith.mulf %3, %5 : vector<2x8x128xf32>
    %7 = arith.mulf %4, %5 : vector<2x8x128xf32>
    %8 = arith.mulf %6, %7 : vector<2x8x128xf32>
    %9 = vector.shape_cast %8 : vector<2x8x128xf32> to vector<2x1x8x128xf32>
    %cst = arith.constant dense<0.000000e+00> : vector<2x8x128xf32>
    %10 = vector.multi_reduction <add>, %9, %cst [1] : vector<2x1x8x128xf32> to vector<2x8x128xf32>
    %11 = arith.mulf %6, %6 : vector<2x8x128xf32>
    %12 = vector.shape_cast %11 : vector<2x8x128xf32> to vector<2x1x8x128xf32>
    %cst_9 = arith.constant dense<0.000000e+00> : vector<2x8x128xf32>
    %13 = vector.multi_reduction <add>, %12, %cst_9 [1] : vector<2x1x8x128xf32> to vector<2x8x128xf32>
    %14 = arith.mulf %7, %7 : vector<2x8x128xf32>
    %15 = vector.shape_cast %14 : vector<2x8x128xf32> to vector<2x1x8x128xf32>
    %cst_10 = arith.constant dense<0.000000e+00> : vector<2x8x128xf32>
    %16 = vector.multi_reduction <add>, %15, %cst_10 [1] : vector<2x1x8x128xf32> to vector<2x8x128xf32>
    %c0_11 = arith.constant 0 : index
    %c0_12 = arith.constant 0 : index
    %c0_13 = arith.constant 0 : index
    %c0_14 = arith.constant 0 : index
    %17 = vector.load %arg5[%c0_11, %c0_12, %c0_13, %c0_14] : memref<1x6x8x128xf32, #tpu.memory_space<vmem>>, vector<1x6x8x128xf32>
    %18 = tpu.concatenate %10, %13, %16 in 0 : vector<2x8x128xf32>, vector<2x8x128xf32>, vector<2x8x128xf32> -> vector<6x8x128xf32>
    %19 = vector.shape_cast %18 : vector<6x8x128xf32> to vector<1x6x8x128xf32>
    %20 = arith.addf %17, %19 : vector<1x6x8x128xf32>
    %c0_15 = arith.constant 0 : index
    %c0_16 = arith.constant 0 : index
    %c0_17 = arith.constant 0 : index
    %c0_18 = arith.constant 0 : index
    %21 = vector.load %arg5[%c0_15, %c0_16, %c0_17, %c0_18] : memref<1x6x8x128xf32, #tpu.memory_space<vmem>>, vector<1x6x8x128xf32>
    tpu.vector_store %arg5[%c0_15, %c0_16, %c0_17, %c0_18], %20 {strides = array<i32>} : memref<1x6x8x128xf32, #tpu.memory_space<vmem>>, vector<1x6x8x128xf32>,
    return
  }
  func.func @transform_0(%arg0: i32, %arg1: i32) -> (i32, i32, i32) {
    %c1_i32 = arith.constant 1 : i32
    %0 = arith.muli %arg0, %c1_i32 : i32
    %1 = arith.addi %0, %arg1 : i32
    %c0_i32 = arith.constant 0 : i32
    %2 = arith.minsi %1, %c0_i32 : i32
    %c0_i32_0 = arith.constant 0 : i32
    %c0_i32_1 = arith.constant 0 : i32
    %c0_i32_2 = arith.constant 0 : i32
    return %c0_i32_0, %2, %c0_i32_1 : i32, i32, i32
  }
  func.func @transform_1(%arg0: i32, %arg1: i32) -> (i32, i32, i32) {
    %c1_i32 = arith.constant 1 : i32
    %0 = arith.muli %arg0, %c1_i32 : i32
    %1 = arith.addi %0, %arg1 : i32
    %c0_i32 = arith.constant 0 : i32
    %2 = arith.minsi %1, %c0_i32 : i32
    %c0_i32_0 = arith.constant 0 : i32
    %c0_i32_1 = arith.constant 0 : i32
    %c0_i32_2 = arith.constant 0 : i32
    return %c0_i32_0, %2, %c0_i32_1 : i32, i32, i32
  }
  func.func @transform_2(%arg0: i32, %arg1: i32) -> (i32, i32, i32) {
    %c1_i32 = arith.constant 1 : i32
    %0 = arith.muli %arg0, %c1_i32 : i32
    %1 = arith.addi %0, %arg1 : i32
    %c0_i32 = arith.constant 0 : i32
    %2 = arith.minsi %1, %c0_i32 : i32
    %c0_i32_0 = arith.constant 0 : i32
    %c0_i32_1 = arith.constant 0 : i32
    %c0_i32_2 = arith.constant 0 : i32
    return %c0_i32_0, %2, %c0_i32_1 : i32, i32, i32
  }
  func.func @transform_3(%arg0: i32, %arg1: i32) -> (i32, i32, i32, i32) {
    %c0_i32 = arith.constant 0 : i32
    %c0_i32_0 = arith.constant 0 : i32
    %c0_i32_1 = arith.constant 0 : i32
    %c0_i32_2 = arith.constant 0 : i32
    return %arg0, %c0_i32, %c0_i32_0, %c0_i32_1 : i32, i32, i32, i32
  }
}

</mosaic_0001>

<bundles_post_ra>
// kernel: tpu_custom_call.1
= control target key start
LH: loop header
LB: loop body
LE: loop exit
PB: predicated region body
PF: predicated region fallthrough
CT: control target
= control target key end

     0   :  { %8 = vsyncpa [#allocation3], 0  ;;  %s297_s0 = inlined_call_operand.hbm [shape: f32[2,8,128], index: 0, kind: input, shape index: {}]   ;;  %s298_s1 = inlined_call_operand.hbm [shape: f32[2,8,128], index: 1, kind: input, shape index: {}]   ;;  %s299_s2 = inlined_call_operand.hbm [shape: f32[2,8,128], index: 2, kind: input, shape index: {}]   ;;  %s300_s3 = inlined_call_operand.hbm [shape: f32[1,6,8,128], index: 3, kind: output, shape index: {}]  }
   0x1   :  { %9 = vsyncpa [#allocation6], 0 }
   0x2   :  { %10 = vsyncpa [#allocation4], 0  ;;  %s247_s12 = smov [#allocation5]   ;;  %s248_s14 = smov [#allocation2]  }
   0x3   :  { %s38_s13 = sshll.u32 %s247_s12, 4  ;;  %s21_s15 = sshll.u32 %s248_s14, 4  ;;  %s39_s13 = int_to_ptr.vmem [resolvable:$true] %s38_s13  ;;  %s22_s15 = int_to_ptr.vmem [resolvable:$true] %s21_s15 }
   0x4   :  { %s169_s16 = scalar_lea.vmem %s39_s13, 256  ;;  %p174_p1 = scmp.lt.s32.totalorder %s39_s13, %s39_s13 }
   0x5   :  { %p170_p0 = scmp.ne.s32.totalorder %s39_s13, %s169_s16  ;;  %p175_p2 = scmp.lt.s32.totalorder %s169_s16, %s169_s16 }
   0x7   :  { %p176_p3 = por %p175_p2, %p174_p1 }
   0x9   :  { %p177_p4 = pnand %p176_p3, %p170_p0 }
   0xb   :  { %180 = shalt.err (!%p177_p4)
}
   0xc   :  { %s249_s17 = smov 128   ;;  %s250_s18 = smov 8  }
   0xd   :  { %44 = dma.hbm_to_vmem [thread:$0]  %s298_s1, 256, %s39_s13, [#allocation6], %s249_s17, %s249_s17, %s250_s18  }
   0xe   :  { %s189_s21 = scalar_lea.vmem %s22_s15, 256  ;;  %p194_p6 = scmp.lt.s32.totalorder %s22_s15, %s22_s15 }
   0xf   :  { %p190_p5 = scmp.ne.s32.totalorder %s22_s15, %s189_s21  ;;  %p195_p7 = scmp.lt.s32.totalorder %s189_s21, %s189_s21 }
  0x11   :  { %p196_p8 = por %p195_p7, %p194_p6 }
  0x13   :  { %p197_p9 = pnand %p196_p8, %p190_p5 }
  0x15   :  { %200 = shalt.err (!%p197_p9)
}
  0x16   :  { %27 = dma.hbm_to_vmem [thread:$0]  %s297_s0, 256, %s22_s15, [#allocation3], %s249_s17, %s249_s17, %s250_s18  }
  0x17   :  { %s251_s24 = smov [#allocation7]  }
  0x18   :  { %s55_s25 = sshll.u32 %s251_s24, 4  ;;  %s56_s25 = int_to_ptr.vmem [resolvable:$true] %s55_s25 }
  0x19   :  { %s209_s26 = scalar_lea.vmem %s56_s25, 256  ;;  %p214_p11 = scmp.lt.s32.totalorder %s56_s25, %s56_s25 }
  0x1a   :  { %p210_p10 = scmp.ne.s32.totalorder %s56_s25, %s209_s26  ;;  %p215_p12 = scmp.lt.s32.totalorder %s209_s26, %s209_s26 }
  0x1c   :  { %p216_p13 = por %p215_p12, %p214_p11 }
  0x1e   :  { %p217_p0 = pnand %p216_p13, %p210_p10 }
  0x20   :  { %220 = shalt.err (!%p217_p0)
}
  0x21   :  { %61 = dma.hbm_to_vmem [thread:$0]  %s299_s2, 256, %s56_s25, [#allocation6], %s249_s17, %s249_s17, %s250_s18  }
  0x22   :  { %241 = dma.done.wait [#allocation3], 256  }
  0x23   :  { %242 = vsyncadd [#allocation3], 4294967040 }
  0x24   :  { %243 = dma.done.wait [#allocation6], 512  }
  0x25   :  { %244 = vsyncadd [#allocation6], 4294966784  ;;  %v90_v0 = vld [vmem:[#allocation2] sm:$0xff]  ;;  %v92_v1 = vld [vmem:[#allocation5] sm:$0xff]  ;;  %s252_s0 = smov [#allocation8]  }
  0x26   :  { %v94_v2 = vld [vmem:[#allocation7] sm:$0xff]  ;;  %v91_v5 = vld [vmem:[#allocation2 + $0x8] sm:$0xff]  ;;  %v93_v6 = vld [vmem:[#allocation5 + $0x8] sm:$0xff]  ;;  %s135_s28 = sshll.u32 %s252_s0, 4  ;;  %s136_s28 = int_to_ptr.vmem [resolvable:$true] %s135_s28 }
  0x27   :  { %v96_v3 = vmul.f32 %v94_v2, %v90_v0  ;;  %v98_v4 = vmul.f32 %v94_v2, %v92_v1  ;;  %v95_v7 = vld [vmem:[#allocation7 + $0x8] sm:$0xff]  ;;  %s221_s2 = scalar_lea.vmem %s136_s28, 768  ;;  %p226_p2 = scmp.lt.s32.totalorder %s136_s28, %s136_s28 }
  0x28   :  { %v97_v8 = vmul.f32 %v95_v7, %v91_v5  ;;  %v99_v9 = vmul.f32 %v95_v7, %v93_v6  ;;  %p222_p1 = scmp.ne.s32.totalorder %s136_s28, %s221_s2  ;;  %p227_p3 = scmp.lt.s32.totalorder %s221_s2, %s221_s2 }
  0x29   :  { %v100_v10 = vmul.f32 %v98_v4, %v96_v3  ;;  %v104_v11 = vmul.f32 %v96_v3, %v96_v3  ;;  %v108_v12 = vmul.f32 %v98_v4, %v98_v4 }
  0x2a   :  { %v101_v13 = vmul.f32 %v99_v9, %v97_v8  ;;  %v105_v14 = vmul.f32 %v97_v8, %v97_v8  ;;  %v109_v15 = vmul.f32 %v99_v9, %v99_v9  ;;  %p228_p4 = por %p227_p3, %p226_p2 }
  0x2b   :  { %124 = vst [vmem:[#allocation8] sm:$0xff] %v100_v10  ;;  %126 = vst [vmem:[#allocation8 + $0x10] sm:$0xff] %v104_v11 }
  0x2c   :  { %128 = vst [vmem:[#allocation8 + $0x20] sm:$0xff] %v108_v12  ;;  %125 = vst [vmem:[#allocation8 + $0x8] sm:$0xff] %v101_v13  ;;  %p229_p5 = pnand %p228_p4, %p222_p1 }
  0x2d   :  { %127 = vst [vmem:[#allocation8 + $0x18] sm:$0xff] %v105_v14  ;;  %129 = vst [vmem:[#allocation8 + $0x28] sm:$0xff] %v109_v15 }
  0x2e   :  { %232 = shalt.err (!%p229_p5)
}
  0x2f   :  { %141 = dma.vmem_to_hbm [thread:$0]  %s136_s28, 768, %s300_s3, [#allocation4], %s249_s17, %s249_s17, %s250_s18  }
  0x30   :  { %245 = dma.done.wait [#allocation4], 768  }
  0x31   :  { %246 = vsyncadd [#allocation4], 4294966528 }
  0x32   :  { %145 = vsyncpa [#allocation3], 1 }
  0x33   :  { %146 = vsyncpa [#allocation6], 1 }
  0x34   :  { %147 = vsyncpa [#allocation4], 1 }

</bundles_post_ra>
